<compile_context>
chip_gen: v6e
topology: v6e:2x2x1
jax: 0.10.0
libtpu: 0.0.40
codegen_flags: <defaults>
</compile_context>

<pallas_src>
import functools

import jax
import jax.numpy as jnp
from jax import lax
from jax.experimental import pallas as pl
from jax.experimental.pallas import tpu as pltpu


def _round_up(x, m):
    return (x + m - 1) // m * m


def _pick_row_tile(m):
    """Largest convenient row tile dividing m (m is always a multiple of 8)."""
    for cand in (512, 256, 128, 64, 32, 16):
        if m % cand == 0:
            return cand
    return m  # fall back to a single full row block


def _pick_col_tile(n, k):
    """Largest lane-dense column tile (>=512) keeping the bf16 weight tile modest."""
    for cand in (2048, 1024, 512):
        if n % cand == 0 and k * cand * 2 <= 8 * 1024 * 1024:
            return cand
    return 512


def _sigmoid(x):
    # sigmoid(x) = 0.5 * tanh(0.5 * x) + 0.5  -> single EUP op per element.
    return 0.5 * jnp.tanh(0.5 * x) + 0.5


# ---------------------------------------------------------------------------
# Kernel 1: tiled matmul + bias (input projection and vocab projection).
# Grid = (col_tiles, row_tiles) -- rows innermost -- so each (K, tn) weight
# tile is fetched from HBM once and only the small (tm, K) activation tiles
# re-stream.
# ---------------------------------------------------------------------------
def _matmul_bias_kernel(x_ref, w_ref, b_ref, o_ref):
    o_ref[...] = (jnp.dot(x_ref[...], w_ref[...],
                          preferred_element_type=jnp.float32)
                  + b_ref[...]).astype(o_ref.dtype)


def matmul_bias_pallas(x, w, b, *, tm, tn, out_dtype):
    M, K = x.shape
    _, N = w.shape
    return pl.pallas_call(
        _matmul_bias_kernel,
        out_shape=jax.ShapeDtypeStruct((M, N), out_dtype),
        grid_spec=pltpu.PrefetchScalarGridSpec(
            num_scalar_prefetch=0,
            grid=(N // tn, M // tm),                      # rows innermost
            in_specs=[
                pl.BlockSpec((tm, K), lambda j, i: (i, 0)),
                pl.BlockSpec((K, tn), lambda j, i: (0, j)),
                pl.BlockSpec((1, tn), lambda j, i: (0, j)),
            ],
            out_specs=pl.BlockSpec((tm, tn), lambda j, i: (i, j)),
        ),
        compiler_params=pltpu.CompilerParams(
            dimension_semantics=("parallel", "parallel"),
        ),
    )(x, w, b)


# ---------------------------------------------------------------------------
# Kernel 2: LSTM recurrence.  Grid = (batch_chunks, time_chunks); h/c carried
# in VMEM scratch across time chunks.  Per step: gates = x_proj[t] + h @ W_hh.
# ---------------------------------------------------------------------------
def _lstm_kernel(xp_ref, w_ref, h_out_ref, h_sc, c_sc, *, chunk, hidden_pad):
    Hp = hidden_pad

    # PyTorch default: zero initial (h, c); reset at the start of each batch chunk.
    @pl.when(pl.program_id(1) == 0)
    def _():
        h_sc[...] = jnp.zeros_like(h_sc)
        c_sc[...] = jnp.zeros_like(c_sc)

    w_hh = w_ref[...]                                    # (Hp, 4Hp) bf16, hoisted

    def step(t, carry):
        h_prev, c_prev = carry                           # f32 (Bb, Hp)
        gates = jnp.dot(h_prev.astype(jnp.bfloat16), w_hh,
                        preferred_element_type=jnp.float32)
        gates = gates + xp_ref[t].astype(jnp.float32)    # (Bb, 4Hp), order i,f,g,o
        i = _sigmoid(gates[:, 0 * Hp:1 * Hp])
        f = _sigmoid(gates[:, 1 * Hp:2 * Hp])
        g = jnp.tanh(gates[:, 2 * Hp:3 * Hp])
        o = _sigmoid(gates[:, 3 * Hp:4 * Hp])
        c = f * c_prev + i * g
        h = o * jnp.tanh(c)
        h_out_ref[t] = h.astype(h_out_ref.dtype)
        return h, c

    # Fully unrolled so the LLO scheduler overlaps step-t stores / scalar
    # addressing with step-(t+1) matmul pushes.
    h_fin, c_fin = lax.fori_loop(0, chunk, step, (h_sc[...], c_sc[...]),
                                 unroll=True)
    h_sc[...] = h_fin
    c_sc[...] = c_fin


def lstm_pallas(x_proj, w_hh_cat, *, batch_block, time_block, hidden_pad):
    """x_proj: (Tp, Bp, 4Hp) bf16 -> hidden states (Tp, Bp, Hp) bf16."""
    Tp, Bp, fourHp = x_proj.shape
    Hp = hidden_pad
    nB = Bp // batch_block
    nT = Tp // time_block

    kernel = functools.partial(_lstm_kernel, chunk=time_block, hidden_pad=Hp)

    def build(single_buffer_w):
        if single_buffer_w:
            # Grid-invariant block: double buffering only wastes VMEM.
            w_spec = pl.BlockSpec((Hp, fourHp), lambda b, t: (0, 0),
                                  pipeline_mode=pl.Buffered(1))
        else:
            w_spec = pl.BlockSpec((Hp, fourHp), lambda b, t: (0, 0))
        return pl.pallas_call(
            kernel,
            out_shape=jax.ShapeDtypeStruct((Tp, Bp, Hp), jnp.bfloat16),
            grid_spec=pltpu.PrefetchScalarGridSpec(
                num_scalar_prefetch=0,
                grid=(nB, nT),
                in_specs=[
                    pl.BlockSpec((time_block, batch_block, fourHp),
                                 lambda b, t: (t, b, 0)),
                    w_spec,
                ],
                out_specs=pl.BlockSpec((time_block, batch_block, Hp),
                                       lambda b, t: (t, b, 0)),
                scratch_shapes=[
                    pltpu.VMEM((batch_block, Hp), jnp.float32),   # h carry
                    pltpu.VMEM((batch_block, Hp), jnp.float32),   # c carry
                ],
            ),
            compiler_params=pltpu.CompilerParams(
                dimension_semantics=("parallel", "arbitrary"),
                vmem_limit_bytes=48 * 1024 * 1024,
            ),
        )

    try:
        return build(True)(x_proj, w_hh_cat)
    except Exception:
        # Fallback if Buffered(1) is unsupported; genuine kernel errors will
        # re-raise from this second call as well.
        return build(False)(x_proj, w_hh_cat)


# ---------------------------------------------------------------------------
# Parameters (synthetic, matching nn.Embedding / nn.LSTM / nn.Linear shapes)
# ---------------------------------------------------------------------------
def init_decoder_params(key, embed_size, hidden_size, vocab_size):
    ks = jax.random.split(key, 7)

    def xavier(k, shape):
        fan_in, fan_out = shape[1], shape[0]
        bound = jnp.sqrt(6.0 / (fan_in + fan_out))
        return jax.random.uniform(k, shape, jnp.float32, -bound, bound)

    def lstm_uniform(k, shape):
        bound = 1.0 / jnp.sqrt(hidden_size)
        return jax.random.uniform(k, shape, jnp.float32, -bound, bound)

    return {
        "embed_w": xavier(ks[0], (vocab_size, embed_size)),            # nn.Embedding
        "w_ih": lstm_uniform(ks[1], (4 * hidden_size, embed_size)),    # lstm.weight_ih_l0
        "w_hh": lstm_uniform(ks[2], (4 * hidden_size, hidden_size)),   # lstm.weight_hh_l0
        "b_ih": lstm_uniform(ks[3], (4 * hidden_size,)),
        "b_hh": lstm_uniform(ks[4], (4 * hidden_size,)),
        "fc_w": xavier(ks[5], (vocab_size, hidden_size)),              # fcl.weight
        "fc_b": jax.random.uniform(ks[6], (vocab_size,), jnp.float32,
                                   -1.0 / jnp.sqrt(hidden_size),
                                   1.0 / jnp.sqrt(hidden_size)),
    }


# ---------------------------------------------------------------------------
# Forward (exact structure of DecoderRNN.forward)
# ---------------------------------------------------------------------------
def decoder_rnn_forward(params, features, captions, hidden_size):
    """features: (B, E) f32, captions: (B, L) int32 -> (B, L, V) f32."""
    B, E = features.shape
    V, H = params["fc_w"].shape
    assert H == hidden_size

    # Embedding lookup + prepend image feature as timestep 0 (plain JAX glue).
    cap = captions[:, :-1]
    emb = jnp.take(params["embed_w"], cap, axis=0)                 # (B, L-1, E)
    inputs = jnp.concatenate([features[:, None, :], emb], axis=1)  # (B, T, E)
    T = inputs.shape[1]

    # TPU-friendly padded sizes.
    Bp = _round_up(B, 8)
    Ep = _round_up(E, 128)
    Hp = _round_up(H, 128)
    Vp = _round_up(V, 512)          # lane-dense (>=512) FC output tiles

    # Time chunking for the recurrence (auto-pipelined "arbitrary" grid axis).
    TC = T if T <= 16 else 16
    Tp = _round_up(T, TC)
    # Batch chunking: split across TensorCores when the batch is big enough
    # (chunks keep a bf16-friendly sublane multiple of 16).
    Bb = Bp // 2 if Bp % 32 == 0 else Bp

    # Time-major, zero-padded input slab, bf16 for the MXU.
    x_tbe = jnp.transpose(inputs, (1, 0, 2)).astype(jnp.float32)   # (T, B, E)
    x_tbe = jnp.pad(x_tbe, ((0, Tp - T), (0, Bp - B), (0, Ep - E)))
    x_flat = x_tbe.reshape(Tp * Bp, Ep).astype(jnp.bfloat16)

    # Fused, zero-padded gate weights (cols = [i | f | g | o], Hp lanes each).
    # Zero padding keeps the padded h/c lanes exactly 0 through the recurrence.
    w_ih, w_hh = params["w_ih"], params["w_hh"]                    # (4H,E), (4H,H)
    b_all = params["b_ih"] + params["b_hh"]                        # (4H,)
    wih_blk, whh_blk, b_blk = [], [], []
    for g in range(4):
        wih_blk.append(jnp.pad(w_ih[g * H:(g + 1) * H, :].T,
                               ((0, Ep - E), (0, Hp - H))))        # (Ep, Hp)
        whh_blk.append(jnp.pad(w_hh[g * H:(g + 1) * H, :].T,
                               ((0, Hp - H), (0, Hp - H))))        # (Hp, Hp)
        b_blk.append(jnp.pad(b_all[g * H:(g + 1) * H], (0, Hp - H)))
    w_ih_cat = jnp.concatenate(wih_blk, axis=1).astype(jnp.bfloat16)   # (Ep, 4Hp)
    w_hh_cat = jnp.concatenate(whh_blk, axis=1).astype(jnp.bfloat16)   # (Hp, 4Hp)
    b_cat = jnp.concatenate(b_blk)[None, :].astype(jnp.float32)        # (1, 4Hp)

    M = Tp * Bp

    # 1) Input projection (+ bias) for every timestep: one parallel matmul.
    x_proj = matmul_bias_pallas(
        x_flat, w_ih_cat, b_cat,
        tm=_pick_row_tile(M), tn=_pick_col_tile(4 * Hp, Ep),
        out_dtype=jnp.bfloat16,
    ).reshape(Tp, Bp, 4 * Hp)

    # 2) Serial LSTM recurrence (only h_prev @ W_hh per step).
    hs = lstm_pallas(x_proj, w_hh_cat,
                     batch_block=Bb, time_block=TC, hidden_pad=Hp)  # (Tp,Bp,Hp) bf16

    # 3) Vocab projection as one large weight-stationary matmul.
    w_fc = jnp.pad(params["fc_w"].T,
                   ((0, Hp - H), (0, Vp - V))).astype(jnp.bfloat16)  # (Hp, Vp)
    b_fc = jnp.pad(params["fc_b"], (0, Vp - V))[None, :].astype(jnp.float32)
    logits_flat = matmul_bias_pallas(
        hs.reshape(M, Hp), w_fc, b_fc,
        tm=_pick_row_tile(M), tn=_pick_col_tile(Vp, Hp),
        out_dtype=jnp.float32,
    )                                                               # (M, Vp)

    logits = logits_flat.reshape(Tp, Bp, Vp)[:T, :B, :V]            # (T, B, V)
    return jnp.transpose(logits, (1, 0, 2))                         # (B, T, V)


# ---------------------------------------------------------------------------
# Pure-JAX f32 reference (lax.scan LSTM) for correctness checking.
# ---------------------------------------------------------------------------
def decoder_rnn_reference(params, features, captions, hidden_size):
    cap = captions[:, :-1]
    emb = jnp.take(params["embed_w"], cap, axis=0)
    inputs = jnp.concatenate([features[:, None, :], emb], axis=1)  # (B, T, E)
    x_tbe = jnp.transpose(inputs, (1, 0, 2))                       # (T, B, E)

    B = inputs.shape[0]
    H = hidden_size
    w_ih_t, w_hh_t = params["w_ih"].T, params["w_hh"].T
    b = params["b_ih"] + params["b_hh"]

    def step(carry, x_t):
        h, c = carry
        gates = x_t @ w_ih_t + h @ w_hh_t + b
        i = jax.nn.sigmoid(gates[:, 0 * H:1 * H])
        f = jax.nn.sigmoid(gates[:, 1 * H:2 * H])
        g = jnp.tanh(gates[:, 2 * H:3 * H])
        o = jax.nn.sigmoid(gates[:, 3 * H:4 * H])
        c = f * c + i * g
        h = o * jnp.tanh(c)
        return (h, c), h

    h0 = jnp.zeros((B, H), jnp.float32)
    c0 = jnp.zeros((B, H), jnp.float32)
    _, hs = jax.lax.scan(step, (h0, c0), x_tbe)                    # (T, B, H)
    logits = hs @ params["fc_w"].T + params["fc_b"]                # (T, B, V)
    return jnp.transpose(logits, (1, 0, 2))


# TODO(synk): the greedy `sample()` decode loop (data-dependent while) is not
# implemented as a kernel; only the training-time forward pass is.

if __name__ == "__main__":
    embed_size = 32
    hidden_size = 32
    vocab_size = 128
    batch = 2
    cap_len = 8   # T = cap_len (drop last caption token, prepend image feature)

    key = jax.random.PRNGKey(0)
    k_param, k_feat, k_cap = jax.random.split(key, 3)

    params = init_decoder_params(k_param, embed_size, hidden_size, vocab_size)
    features = jax.random.normal(k_feat, (batch, embed_size), jnp.float32)
    captions = jax.random.randint(k_cap, (batch, cap_len), 0, vocab_size,
                                  dtype=jnp.int32)

    out = decoder_rnn_forward(params, features, captions, hidden_size)
    out = jax.block_until_ready(out)

    ref = decoder_rnn_reference(params, features, captions, hidden_size)
    ref = jax.block_until_ready(ref)

    assert out.shape == (batch, cap_len, vocab_size), out.shape
    # Kernel uses bf16 MXU operands with f32 accumulation; tolerance sized for
    # bf16 rounding vs. the pure-f32 reference (structural bugs would be >>0.05).
    assert jnp.allclose(out, ref, rtol=5e-2, atol=5e-2), \
        float(jnp.max(jnp.abs(out - ref)))

    print("KERNEL_OK")
</pallas_src>

<mosaic_0001>
module attributes {stable_mosaic.version = 11 : i64} {
  func.func @_matmul_bias_kernel(%arg0: i32, %arg1: i32, %arg2: memref<64x128xbf16, #tpu.memory_space<vmem>>, %arg3: memref<128x512xbf16, #tpu.memory_space<vmem>>, %arg4: memref<1x512xf32, #tpu.memory_space<vmem>>, %arg5: memref<64x512xbf16, #tpu.memory_space<vmem>>) attributes {dimension_semantics = [#tpu.dimension_semantics<parallel>, #tpu.dimension_semantics<parallel>], iteration_bounds = array<i64: 1, 1>, scalar_prefetch = 0 : i64, scratch_operands = 0 : i64, tpu.core_type = #tpu.core_type<tc>, window_params = [{transform_indices = @transform_0, window_bounds = array<i64: 64, 128>}, {transform_indices = @transform_1, window_bounds = array<i64: 128, 512>}, {transform_indices = @transform_2, window_bounds = array<i64: 1, 512>}, {transform_indices = @transform_3, window_bounds = array<i64: 64, 512>}]} {
    %c0 = arith.constant 0 : index
    %c0_0 = arith.constant 0 : index
    %0 = vector.load %arg2[%c0, %c0_0] : memref<64x128xbf16, #tpu.memory_space<vmem>>, vector<64x128xbf16>
    %c0_1 = arith.constant 0 : index
    %c0_2 = arith.constant 0 : index
    %1 = vector.load %arg3[%c0_1, %c0_2] : memref<128x512xbf16, #tpu.memory_space<vmem>>, vector<128x512xbf16>
    %cst = arith.constant dense<0.000000e+00> : vector<64x512xf32>
    %2 = tpu.matmul %0, %1, %cst {dimension_numbers = #tpu.dot_dimension_numbers<[1], [0], [0], [1], [0, 0, 1, 1], [], []>} : vector<64x128xbf16>, vector<128x512xbf16>, vector<64x512xf32> -> vector<64x512xf32>
    %c0_3 = arith.constant 0 : index
    %c0_4 = arith.constant 0 : index
    %3 = vector.load %arg4[%c0_3, %c0_4] : memref<1x512xf32, #tpu.memory_space<vmem>>, vector<1x512xf32>
    %4 = vector.broadcast %3 : vector<1x512xf32> to vector<64x512xf32>
    %5 = arith.addf %2, %4 : vector<64x512xf32>
    %6 = arith.truncf %5 : vector<64x512xf32> to vector<64x512xbf16>
    %c0_5 = arith.constant 0 : index
    %c0_6 = arith.constant 0 : index
    %7 = vector.load %arg5[%c0_5, %c0_6] : memref<64x512xbf16, #tpu.memory_space<vmem>>, vector<64x512xbf16>
    tpu.vector_store %arg5[%c0_5, %c0_6], %6 {strides = array<i32>} : memref<64x512xbf16, #tpu.memory_space<vmem>>, vector<64x512xbf16>,
    return
  }
  func.func @transform_0(%arg0: i32, %arg1: i32) -> (i32, i32) {
    %c0_i32 = arith.constant 0 : i32
    %c0_i32_0 = arith.constant 0 : i32
    return %arg1, %c0_i32 : i32, i32
  }
  func.func @transform_1(%arg0: i32, %arg1: i32) -> (i32, i32) {
    %c0_i32 = arith.constant 0 : i32
    %c0_i32_0 = arith.constant 0 : i32
    return %c0_i32, %arg0 : i32, i32
  }
  func.func @transform_2(%arg0: i32, %arg1: i32) -> (i32, i32) {
    %c0_i32 = arith.constant 0 : i32
    %c0_i32_0 = arith.constant 0 : i32
    return %c0_i32, %arg0 : i32, i32
  }
  func.func @transform_3(%arg0: i32, %arg1: i32) -> (i32, i32) {
    %c0_i32 = arith.constant 0 : i32
    return %arg1, %arg0 : i32, i32
  }
}

</mosaic_0001>

<bundles_post_ra>
// kernel: tpu_custom_call.1
= control target key start
LH: loop header
LB: loop body
LE: loop exit
PB: predicated region body
PF: predicated region fallthrough
CT: control target
= control target key end

     0   :  { %8 = vsyncpa [#allocation3], 0  ;;  %s887_s0 = inlined_call_operand.hbm [shape: bf16[64,128], index: 0, kind: input, shape index: {}]   ;;  %s888_s1 = inlined_call_operand.hbm [shape: bf16[128,512], index: 1, kind: input, shape index: {}]   ;;  %s889_s2 = inlined_call_operand.hbm [shape: f32[1,512], index: 2, kind: input, shape index: {}]   ;;  %s890_s3 = inlined_call_operand.hbm [shape: bf16[64,512], index: 3, kind: output, shape index: {}]  }
   0x1   :  { %9 = vsyncpa [#allocation6], 0 }
   0x2   :  { %10 = vsyncpa [#allocation4], 0  ;;  %s792_s12 = smov [#allocation5]  }
   0x3   :  { %s28_s13 = sshll.u32 %s792_s12, 4  ;;  %s29_s13 = int_to_ptr.vmem [resolvable:$true] %s28_s13 }
   0x4   :  { %s714_s14 = scalar_lea.vmem %s29_s13, 4096  ;;  %p719_p1 = scmp.lt.s32.totalorder %s29_s13, %s29_s13 }
   0x5   :  { %p715_p0 = scmp.ne.s32.totalorder %s29_s13, %s714_s14  ;;  %p720_p2 = scmp.lt.s32.totalorder %s714_s14, %s714_s14 }
   0x7   :  { %p721_p3 = por %p720_p2, %p719_p1 }
   0x9   :  { %p722_p4 = pnand %p721_p3, %p715_p0 }
   0xb   :  { %725 = shalt.err (!%p722_p4)
}
   0xc   :  { %s793_s15 = smov 256   ;;  %s794_s16 = smov 16  }
   0xd   :  { %34 = dma.hbm_to_vmem [thread:$0]  %s888_s1, 4096, %s29_s13, [#allocation6], %s793_s15, %s793_s15, %s794_s16  }
   0xe   :  { %s795_s19 = smov [#allocation2]  }
   0xf   :  { %s16_s20 = sshll.u32 %s795_s19, 4  ;;  %s17_s20 = int_to_ptr.vmem [resolvable:$true] %s16_s20 }
  0x10   :  { %s734_s21 = scalar_lea.vmem %s17_s20, 512  ;;  %p739_p6 = scmp.lt.s32.totalorder %s17_s20, %s17_s20 }
  0x11   :  { %p735_p5 = scmp.ne.s32.totalorder %s17_s20, %s734_s21  ;;  %p740_p7 = scmp.lt.s32.totalorder %s734_s21, %s734_s21 }
  0x13   :  { %p741_p8 = por %p740_p7, %p739_p6 }
  0x15   :  { %p742_p9 = pnand %p741_p8, %p735_p5 }
  0x17   :  { %745 = shalt.err (!%p742_p9)
}
  0x18   :  { %s796_s22 = smov 64   ;;  %s797_s23 = smov 4  }
  0x19   :  { %22 = dma.hbm_to_vmem [thread:$0]  %s887_s0, 512, %s17_s20, [#allocation3], %s796_s22, %s796_s22, %s797_s23  }
  0x1a   :  { %s798_s26 = smov [#allocation7]  }
  0x1b   :  { %s41_s27 = sshll.u32 %s798_s26, 4  ;;  %s42_s27 = int_to_ptr.vmem [resolvable:$true] %s41_s27 }
  0x1c   :  { %s754_s1 = scalar_lea.vmem %s42_s27, 64  ;;  %p759_p11 = scmp.lt.s32.totalorder %s42_s27, %s42_s27 }
  0x1d   :  { %p755_p10 = scmp.ne.s32.totalorder %s42_s27, %s754_s1  ;;  %p760_p12 = scmp.lt.s32.totalorder %s754_s1, %s754_s1 }
  0x1f   :  { %p761_p13 = por %p760_p12, %p759_p11 }
  0x21   :  { %p762_p0 = pnand %p761_p13, %p755_p10 }
  0x23   :  { %765 = shalt.err (!%p762_p0)
}
  0x24   :  { %44 = dma.hbm_to_vmem [thread:$0]  %s889_s2, 64, %s42_s27, [#allocation6]  }
  0x25   :  { %786 = dma.done.wait [#allocation3], 512  }
  0x26   :  { %787 = vsyncadd [#allocation3], 4294966784 }
  0x27   :  { %788 = dma.done.wait [#allocation6], 4160  }
  0x28   :  { %789 = vsyncadd [#allocation6], 4294963136  ;;  %v799_v0 = vmov 0   ;;  %v654_v1 = vld [vmem:[#allocation5 + $0xe4] ss:$16 sps:$4 sm:$0xff]   ;;  %v703_v34 = vld [vmem:[#allocation2 + $0x8] sm:$0xff]   ;;  %v97_v37 = vlaneseq }
  0x29   :  { %333 = vmatprep.mubr.bf16.mxu0 %v799_v0  ;;  %406 = vmatprep.mubr.bf16.mxu1 %v799_v0  ;;  %v656_v2 = vld [vmem:[#allocation5 + $0xec] ss:$16 sps:$4 sm:$0xff]   ;;  %v658_v3 = vld [vmem:[#allocation5 + $0xe0] ss:$16 sps:$4 sm:$0xff]   ;;  %v659_v4 = vld [vmem:[#allocation5 + $0xe8] ss:$16 sps:$4 sm:$0xff]  }
  0x2a   :  { %301 = vmatprep.subr.bf16.mxu0 %v654_v1  ;;  %374 = vmatprep.subr.bf16.mxu1 %v656_v2  ;;  %v660_v5 = vld [vmem:[#allocation5 + $0xc4] ss:$16 sps:$4 sm:$0xff]   ;;  %v662_v6 = vld [vmem:[#allocation5 + $0xcc] ss:$16 sps:$4 sm:$0xff]   ;;  %v664_v7 = vld [vmem:[#allocation5 + $0xc0] ss:$16 sps:$4 sm:$0xff]  }
  0x2b   :  { %302 = vmatpush1.bf16.msra.mxu0 %v658_v3  ;;  %375 = vmatpush1.bf16.msra.mxu1 %v659_v4  ;;  %v665_v8 = vld [vmem:[#allocation5 + $0xc8] ss:$16 sps:$4 sm:$0xff]   ;;  %v666_v9 = vld [vmem:[#allocation5 + $0xa4] ss:$16 sps:$4 sm:$0xff]   ;;  %v668_v10 = vld [vmem:[#allocation5 + $0xac] ss:$16 sps:$4 sm:$0xff]  }
  0x2c   :  { %303 = vmatprep.subr.bf16.mxu0 %v660_v5  ;;  %376 = vmatprep.subr.bf16.mxu1 %v662_v6  ;;  %v670_v11 = vld [vmem:[#allocation5 + $0xa0] ss:$16 sps:$4 sm:$0xff]   ;;  %v671_v12 = vld [vmem:[#allocation5 + $0xa8] ss:$16 sps:$4 sm:$0xff]   ;;  %v672_v13 = vld [vmem:[#allocation5 + $0x84] ss:$16 sps:$4 sm:$0xff]  }
  0x2d   :  { %v674_v14 = vld [vmem:[#allocation5 + $0x8c] ss:$16 sps:$4 sm:$0xff]   ;;  %v676_v15 = vld [vmem:[#allocation5 + $0x80] ss:$16 sps:$4 sm:$0xff]   ;;  %v677_v16 = vld [vmem:[#allocation5 + $0x88] ss:$16 sps:$4 sm:$0xff]  }
  0x2e   :  { %v678_v17 = vld [vmem:[#allocation5 + $0x64] ss:$16 sps:$4 sm:$0xff]   ;;  %v680_v18 = vld [vmem:[#allocation5 + $0x6c] ss:$16 sps:$4 sm:$0xff]   ;;  %v682_v19 = vld [vmem:[#allocation5 + $0x60] ss:$16 sps:$4 sm:$0xff]  }
  0x2f   :  { %304 = vmatpush1.bf16.msra.mxu0 %v664_v7  ;;  %377 = vmatpush1.bf16.msra.mxu1 %v665_v8  ;;  %v683_v20 = vld [vmem:[#allocation5 + $0x68] ss:$16 sps:$4 sm:$0xff]   ;;  %v684_v21 = vld [vmem:[#allocation5 + $0x44] ss:$16 sps:$4 sm:$0xff]   ;;  %v686_v22 = vld [vmem:[#allocation5 + $0x4c] ss:$16 sps:$4 sm:$0xff]  }
  0x30   :  { %305 = vmatprep.subr.bf16.mxu0 %v666_v9  ;;  %378 = vmatprep.subr.bf16.mxu1 %v668_v10  ;;  %v688_v23 = vld [vmem:[#allocation5 + $0x40] ss:$16 sps:$4 sm:$0xff]   ;;  %v689_v24 = vld [vmem:[#allocation5 + $0x48] ss:$16 sps:$4 sm:$0xff]   ;;  %v690_v25 = vld [vmem:[#allocation5 + $0x24] ss:$16 sps:$4 sm:$0xff]  }
  0x31   :  { %v692_v26 = vld [vmem:[#allocation5 + $0x2c] ss:$16 sps:$4 sm:$0xff]   ;;  %v694_v27 = vld [vmem:[#allocation5 + $0x20] ss:$16 sps:$4 sm:$0xff]   ;;  %v695_v28 = vld [vmem:[#allocation5 + $0x28] ss:$16 sps:$4 sm:$0xff]  }
  0x32   :  { %v696_v29 = vld [vmem:[#allocation5 + $0x4] ss:$16 sps:$4 sm:$0xff]   ;;  %v698_v30 = vld [vmem:[#allocation5 + $0xc] ss:$16 sps:$4 sm:$0xff]   ;;  %v700_v31 = vld [vmem:[#allocation5] ss:$16 sps:$4 sm:$0xff]  }
  0x33   :  { %306 = vmatpush1.bf16.msra.mxu0 %v670_v11  ;;  %379 = vmatpush1.bf16.msra.mxu1 %v671_v12  ;;  %v701_v32 = vld [vmem:[#allocation5 + $0x8] ss:$16 sps:$4 sm:$0xff]   ;;  %v702_v33 = vld [vmem:[#allocation2] sm:$0xff]   ;;  %v704_v35 = vld [vmem:[#allocation2 + $0x10] sm:$0xff]   ;;  %v98_v38 = vshrl.u32 %v97_v37, 7  ;;  %s800_s0 = smov [#allocation8]  }
  0x34   :  { %307 = vmatprep.subr.bf16.mxu0 %v672_v13  ;;  %380 = vmatprep.subr.bf16.mxu1 %v674_v14  ;;  %v705_v36 = vld [vmem:[#allocation2 + $0x18] sm:$0xff]   ;;  %v95_v43 = vld [vmem:[#allocation7] sm:$0xf]  ;;  %s564_s2 = sshll.u32 %s800_s0, 4  ;;  %s565_s2 = int_to_ptr.vmem [resolvable:$true] %s564_s2 }
  0x35   :  { %v99_v39 = vsub.s32 0, %v98_v38  ;;  %v107_v40 = vsub.s32 2, %v98_v38  ;;  %v103_v41 = vsub.s32 1, %v98_v38  ;;  %v111_v42 = vsub.s32 3, %v98_v38  ;;  %s766_s30 = scalar_lea.vmem %s565_s2, 2048  ;;  %p771_p2 = scmp.lt.s32.totalorder %s565_s2, %s565_s2 }
  0x36   :  { %p767_p1 = scmp.ne.s32.totalorder %s565_s2, %s766_s30  ;;  %p772_p3 = scmp.lt.s32.totalorder %s766_s30, %s766_s30 }
  0x37   :  { %308 = vmatpush1.bf16.msra.mxu0 %v676_v15  ;;  %381 = vmatpush1.bf16.msra.mxu1 %v677_v16  ;;  %v841_v44 = vrot.slane %v95_v43, %v99_v39  ;;  %v843_v45 = vrot.slane %v95_v43, %v107_v40  ;;  %v845_v46 = vrot.slane %v95_v43, %v103_v41 }
  0x38   :  { %309 = vmatprep.subr.bf16.mxu0 %v678_v17  ;;  %382 = vmatprep.subr.bf16.mxu1 %v680_v18  ;;  %v847_v47 = vrot.slane %v95_v43, %v111_v42  ;;  %p773_p4 = por %p772_p3, %p771_p2 }
  0x3a   :  { %p774_p5 = pnand %p773_p4, %p767_p1 }
  0x3b   :  { %310 = vmatpush1.bf16.msra.mxu0 %v682_v19  ;;  %383 = vmatpush1.bf16.msra.mxu1 %v683_v20 }
  0x3c   :  { %311 = vmatprep.subr.bf16.mxu0 %v684_v21  ;;  %384 = vmatprep.subr.bf16.mxu1 %v686_v22 }
  0x3f   :  { %312 = vmatpush1.bf16.msra.mxu0 %v688_v23  ;;  %385 = vmatpush1.bf16.msra.mxu1 %v689_v24 }
  0x40   :  { %313 = vmatprep.subr.bf16.mxu0 %v690_v25  ;;  %386 = vmatprep.subr.bf16.mxu1 %v692_v26 }
  0x43   :  { %314 = vmatpush1.bf16.msra.mxu0 %v694_v27  ;;  %387 = vmatpush1.bf16.msra.mxu1 %v695_v28 }
  0x44   :  { %315 = vmatprep.subr.bf16.mxu0 %v696_v29  ;;  %388 = vmatprep.subr.bf16.mxu1 %v698_v30 }
  0x47   :  { %316 = vmatpush1.bf16.msra.mxu0 %v700_v31  ;;  %389 = vmatpush1.bf16.msra.mxu1 %v701_v32 }
  0x4a   :  { %334 = vmatmul.mubr.bf16.vlgmr.msra.gmra.mxu0 %v702_v33  ;;  %407 = vmatmul.mubr.bf16.vlgmr.msra.gmra.mxu1 %v702_v33 }
  0x4b   :  { %343 = vmatprep.mubr.bf16.mxu0 %v799_v0  ;;  %416 = vmatprep.mubr.bf16.mxu1 %v799_v0 }
  0x52   :  { %344 = vmatmul.mubr.bf16.gmra.mxu0 %v703_v34  ;;  %417 = vmatmul.mubr.bf16.gmra.mxu1 %v703_v34 }
  0x53   :  { %353 = vmatprep.mubr.bf16.mxu0 %v799_v0  ;;  %426 = vmatprep.mubr.bf16.mxu1 %v799_v0 }
  0x5a   :  { %354 = vmatmul.mubr.bf16.gmra.mxu0 %v704_v35  ;;  %427 = vmatmul.mubr.bf16.gmra.mxu1 %v704_v35 }
  0x5b   :  { %363 = vmatprep.mubr.bf16.mxu0 %v799_v0  ;;  %436 = vmatprep.mubr.bf16.mxu1 %v799_v0 }
  0x62   :  { %364 = vmatmul.mubr.bf16.gmra.mxu0 %v705_v36  ;;  %437 = vmatmul.mubr.bf16.gmra.mxu1 %v705_v36 }
 0x10a   :  { %v335_v48 = vpop.f32.mrf.mxu0  ;;  %v408_v49 = vpop.f32.mrf.mxu1 }
 0x10b   :  { %v336_v52 = vadd.f32 %v335_v48, %v841_v44  ;;  %v409_v53 = vadd.f32 %v408_v49, %v843_v45 }
 0x10c   :  { %v337_v50 = vpop.f32.mrf.mxu0  ;;  %v410_v51 = vpop.f32.mrf.mxu1 }
 0x10d   :  { %v338_v54 = vadd.f32 %v337_v50, %v845_v46  ;;  %v411_v55 = vadd.f32 %v410_v51, %v847_v47 }
 0x10e   :  { %v339_v56 = vpop.f32.mrf.mxu0  ;;  %v412_v57 = vpop.f32.mrf.mxu1 }
 0x10f   :  { %v629_v58 = vpack.c.bf16 %v338_v54, %v336_v52  ;;  %v630_v59 = vpack.c.bf16 %v411_v55, %v409_v53  ;;  %v340_v62 = vadd.f32 %v339_v56, %v841_v44  ;;  %v413_v63 = vadd.f32 %v412_v57, %v843_v45 }
 0x110   :  { %v341_v60 = vpop.f32.mrf.mxu0  ;;  %v414_v61 = vpop.f32.mrf.mxu1 }
 0x111   :  { %543 = vst [vmem:[#allocation8] sm:$0xff] %v629_v58  ;;  %544 = vst [vmem:[#allocation8 + $0x8] sm:$0xff] %v630_v59  ;;  %v342_v0 = vadd.f32 %v341_v60, %v845_v46  ;;  %v415_v1 = vadd.f32 %v414_v61, %v847_v47 }
 0x112   :  { %v345_v2 = vpop.f32.mrf.mxu0  ;;  %v418_v3 = vpop.f32.mrf.mxu1 }
 0x113   :  { %v631_v4 = vpack.c.bf16 %v342_v0, %v340_v62  ;;  %v632_v5 = vpack.c.bf16 %v415_v1, %v413_v63  ;;  %v346_v8 = vadd.f32 %v345_v2, %v841_v44  ;;  %v419_v9 = vadd.f32 %v418_v3, %v843_v45 }
 0x114   :  { %v347_v6 = vpop.f32.mrf.mxu0  ;;  %v420_v7 = vpop.f32.mrf.mxu1 }
 0x115   :  { %545 = vst [vmem:[#allocation8 + $0x10] sm:$0xff] %v631_v4  ;;  %546 = vst [vmem:[#allocation8 + $0x18] sm:$0xff] %v632_v5  ;;  %v348_v10 = vadd.f32 %v347_v6, %v845_v46  ;;  %v421_v11 = vadd.f32 %v420_v7, %v847_v47 }
 0x116   :  { %v349_v12 = vpop.f32.mrf.mxu0  ;;  %v422_v13 = vpop.f32.mrf.mxu1 }
 0x117   :  { %v633_v14 = vpack.c.bf16 %v348_v10, %v346_v8  ;;  %v634_v15 = vpack.c.bf16 %v421_v11, %v419_v9  ;;  %v350_v18 = vadd.f32 %v349_v12, %v841_v44  ;;  %v423_v19 = vadd.f32 %v422_v13, %v843_v45 }
 0x118   :  { %v351_v16 = vpop.f32.mrf.mxu0  ;;  %v424_v17 = vpop.f32.mrf.mxu1 }
 0x119   :  { %547 = vst [vmem:[#allocation8 + $0x20] sm:$0xff] %v633_v14  ;;  %548 = vst [vmem:[#allocation8 + $0x28] sm:$0xff] %v634_v15  ;;  %v352_v20 = vadd.f32 %v351_v16, %v845_v46  ;;  %v425_v21 = vadd.f32 %v424_v17, %v847_v47 }
 0x11a   :  { %v355_v22 = vpop.f32.mrf.mxu0  ;;  %v428_v23 = vpop.f32.mrf.mxu1 }
 0x11b   :  { %v635_v24 = vpack.c.bf16 %v352_v20, %v350_v18  ;;  %v636_v25 = vpack.c.bf16 %v425_v21, %v423_v19  ;;  %v356_v28 = vadd.f32 %v355_v22, %v841_v44  ;;  %v429_v29 = vadd.f32 %v428_v23, %v843_v45 }
 0x11c   :  { %v357_v26 = vpop.f32.mrf.mxu0  ;;  %v430_v27 = vpop.f32.mrf.mxu1 }
 0x11d   :  { %549 = vst [vmem:[#allocation8 + $0x30] sm:$0xff] %v635_v24  ;;  %550 = vst [vmem:[#allocation8 + $0x38] sm:$0xff] %v636_v25  ;;  %v358_v30 = vadd.f32 %v357_v26, %v845_v46  ;;  %v431_v31 = vadd.f32 %v430_v27, %v847_v47 }
 0x11e   :  { %v359_v32 = vpop.f32.mrf.mxu0  ;;  %v432_v33 = vpop.f32.mrf.mxu1 }
 0x11f   :  { %v637_v34 = vpack.c.bf16 %v358_v30, %v356_v28  ;;  %v638_v35 = vpack.c.bf16 %v431_v31, %v429_v29  ;;  %v360_v38 = vadd.f32 %v359_v32, %v841_v44  ;;  %v433_v39 = vadd.f32 %v432_v33, %v843_v45 }
 0x120   :  { %v361_v36 = vpop.f32.mrf.mxu0  ;;  %v434_v37 = vpop.f32.mrf.mxu1 }
 0x121   :  { %551 = vst [vmem:[#allocation8 + $0x40] sm:$0xff] %v637_v34  ;;  %552 = vst [vmem:[#allocation8 + $0x48] sm:$0xff] %v638_v35  ;;  %v362_v40 = vadd.f32 %v361_v36, %v845_v46  ;;  %v435_v41 = vadd.f32 %v434_v37, %v847_v47 }
 0x122   :  { %v365_v42 = vpop.f32.mrf.mxu0  ;;  %v438_v43 = vpop.f32.mrf.mxu1 }
 0x123   :  { %v639_v48 = vpack.c.bf16 %v362_v40, %v360_v38  ;;  %v640_v49 = vpack.c.bf16 %v435_v41, %v433_v39  ;;  %v366_v52 = vadd.f32 %v365_v42, %v841_v44  ;;  %v439_v53 = vadd.f32 %v438_v43, %v843_v45 }
 0x124   :  { %v367_v50 = vpop.f32.mrf.mxu0  ;;  %v440_v51 = vpop.f32.mrf.mxu1 }
 0x125   :  { %553 = vst [vmem:[#allocation8 + $0x50] sm:$0xff] %v639_v48  ;;  %554 = vst [vmem:[#allocation8 + $0x58] sm:$0xff] %v640_v49  ;;  %v368_v54 = vadd.f32 %v367_v50, %v845_v46  ;;  %v441_v55 = vadd.f32 %v440_v51, %v847_v47 }
 0x126   :  { %v369_v56 = vpop.f32.mrf.mxu0  ;;  %v442_v57 = vpop.f32.mrf.mxu1 }
 0x127   :  { %v641_v58 = vpack.c.bf16 %v368_v54, %v366_v52  ;;  %v642_v59 = vpack.c.bf16 %v441_v55, %v439_v53  ;;  %v370_v62 = vadd.f32 %v369_v56, %v841_v44  ;;  %v443_v63 = vadd.f32 %v442_v57, %v843_v45 }
 0x128   :  { %v371_v60 = vpop.f32.mrf.mxu0  ;;  %v444_v61 = vpop.f32.mrf.mxu1 }
 0x129   :  { %555 = vst [vmem:[#allocation8 + $0x60] sm:$0xff] %v641_v58  ;;  %556 = vst [vmem:[#allocation8 + $0x68] sm:$0xff] %v642_v59  ;;  %v372_v0 = vadd.f32 %v371_v60, %v845_v46  ;;  %v445_v1 = vadd.f32 %v444_v61, %v847_v47 }
 0x12b   :  { %v643_v2 = vpack.c.bf16 %v372_v0, %v370_v62  ;;  %v644_v3 = vpack.c.bf16 %v445_v1, %v443_v63 }
 0x12d   :  { %557 = vst [vmem:[#allocation8 + $0x70] sm:$0xff] %v643_v2  ;;  %558 = vst [vmem:[#allocation8 + $0x78] sm:$0xff] %v644_v3 }
 0x12e   :  { %777 = shalt.err (!%p774_p5)
}
 0x12f   :  { %570 = dma.vmem_to_hbm [thread:$0]  %s565_s2, 2048, %s890_s3, [#allocation4], %s793_s15, %s793_s15, %s794_s16  }
 0x130   :  { %790 = dma.done.wait [#allocation4], 2048  }
 0x131   :  { %791 = vsyncadd [#allocation4], 4294965248 }
 0x132   :  { %574 = vsyncpa [#allocation3], 1 }
 0x133   :  { %575 = vsyncpa [#allocation6], 1 }
 0x134   :  { %576 = vsyncpa [#allocation4], 1 }

</bundles_post_ra>
